<compile_context>
chip_gen: v7x
topology: tpu7x:2x2x1
jax: 0.10.0
libtpu: 0.0.40
codegen_flags: <defaults>
</compile_context>

<pallas_src>
import functools
import math

import jax
import jax.numpy as jnp
from jax import lax
from jax.experimental import pallas as pl
from jax.experimental.pallas import tpu as pltpu


# ----------------------------------------------------------------------------
# Helpers
# ----------------------------------------------------------------------------
def _vmem_limit_bytes():
    """Scoped-VMEM limit with headroom: ~51 MiB on v7x (64 MiB/TC), ~100 MiB on
    the 128 MiB parts (v5e/v6e)."""
    cap = None
    try:
        cap = getattr(pltpu.get_tpu_info(), "vmem_capacity_bytes", None)
    except Exception:
        cap = None
    if not cap:
        cap = 128 * 1024 * 1024
    return int(min(cap * 0.8, 100 * 1024 * 1024))


def _pick_tile(dim, requested, align):
    """Largest tile <= requested that divides `dim` and is a multiple of
    `align`; falls back to the full dim (always a legal block size)."""
    if dim <= requested:
        return dim
    t = (requested // align) * align
    while t >= align:
        if dim % t == 0:
            return t
        t -= align
    return dim


# ----------------------------------------------------------------------------
# Kernel 1: tiled linear   y = x @ W^T + b   (F.linear semantics; W passed
# pre-transposed as (Din, Dout) so the MXU consumes plain (K, N) tiles).
# ----------------------------------------------------------------------------
def _linear_kernel(x_ref, w_ref, b_ref, o_ref, acc_ref):
    k = pl.program_id(2)

    @pl.when(k == 0)
    def _init():
        acc_ref[...] = jnp.zeros_like(acc_ref)

    acc_ref[...] += jnp.dot(x_ref[...], w_ref[...],
                            preferred_element_type=jnp.float32)

    @pl.when(k == pl.num_programs(2) - 1)
    def _finalize():
        o_ref[...] = (acc_ref[...] + b_ref[...]).astype(o_ref.dtype)


def linear(x, w_t, b, *, tm=512, tn=512, tk=512, out_dtype=None):
    """x: (B, T, Din); w_t: (Din, Dout) (already transposed); b: (Dout,)."""
    B, T, Din = x.shape
    Dout = w_t.shape[1]
    M = B * T
    tm = _pick_tile(M, tm, 8)
    tn = _pick_tile(Dout, tn, 128)
    tk = _pick_tile(Din, tk, 128)
    out_dtype = out_dtype or x.dtype

    x2 = x.reshape(M, Din)                 # collapses leading dims only (free)
    b2 = b.reshape(1, Dout).astype(jnp.float32)

    out2 = pl.pallas_call(
        _linear_kernel,
        out_shape=jax.ShapeDtypeStruct((M, Dout), out_dtype),
        grid_spec=pltpu.PrefetchScalarGridSpec(
            num_scalar_prefetch=0,
            grid=(M // tm, Dout // tn, Din // tk),   # reduction axis last
            in_specs=[
                pl.BlockSpec((tm, tk), lambda i, j, k: (i, k)),   # activations
                pl.BlockSpec((tk, tn), lambda i, j, k: (k, j)),   # W^T tile
                pl.BlockSpec((1, tn), lambda i, j, k: (0, j)),    # bias tile
            ],
            out_specs=pl.BlockSpec((tm, tn), lambda i, j, k: (i, j)),
            scratch_shapes=[pltpu.VMEM((tm, tn), jnp.float32)],
        ),
        compiler_params=pltpu.CompilerParams(
            dimension_semantics=("parallel", "parallel", "arbitrary"),
            vmem_limit_bytes=_vmem_limit_bytes()),
    )(x2, w_t, b2)
    return out2.reshape(B, T, Dout)


# ----------------------------------------------------------------------------
# Kernel 2: fused (head split -> attention -> head merge -> out_proj)
# ----------------------------------------------------------------------------
def _fused_attn_body(q_ref, k_ref, v_ref, wo_ref, bo_ref, mb_ref,
                     out_ref, alpha_ref, att_acc,
                     *, num_heads, inv_norm, compute_dtype):
    H = num_heads
    D = q_ref.shape[-1]
    dh = D // H

    # Head-group size: pack heads so each AV store covers full 128-lane vregs
    # (avoids masked / shuffled sub-vreg stores when dh < 128, e.g. dh=64).
    if dh < 128 and 128 % dh == 0 and H % (128 // dh) == 0:
        hpg = 128 // dh
    else:
        hpg = 1
    gw = hpg * dh

    # Fold 1/sqrt(dh) into q once for all heads (scale in f32, keep compute
    # dtype for the MXU inputs).
    q_all = (q_ref[0].astype(jnp.float32) * inv_norm).astype(compute_dtype)
    k_all = k_ref[0]                                         # (T, D)
    v_all = v_ref[0]                                         # (T, D)
    mb = mb_ref[0]                                           # (1, T) add. bias

    for g in range(H // hpg):                                # static, unrolled
        av_parts = []
        for j in range(hpg):
            h = g * hpg + j
            s = slice(h * dh, (h + 1) * dh)
            # scores = q_h @ k_h^T: contract the head dims directly.
            scores = lax.dot_general(
                q_all[:, s], k_all[:, s],
                (((1,), (1,)), ((), ())),
                preferred_element_type=jnp.float32)          # (tq, T)
            scores = scores + mb
            # NOTE: a fully-masked row yields NaN alpha (matches torch softmax).
            m = jnp.max(scores, axis=-1, keepdims=True)
            e = jnp.exp(scores - m)
            inv_denom = pl.reciprocal(jnp.sum(e, axis=-1, keepdims=True),
                                      approx=True)           # EUP slot
            alpha = e * inv_denom
            if alpha_ref is not None:
                alpha_ref[0, h] = alpha.astype(alpha_ref.dtype)
            av_parts.append(
                jnp.dot(alpha.astype(compute_dtype), v_all[:, s],
                        preferred_element_type=jnp.float32))
        av = av_parts[0] if hpg == 1 else jnp.concatenate(av_parts, axis=-1)
        att_acc[:, g * gw:(g + 1) * gw] = av                 # lane-aligned vst

    # Fused out_proj on the lane-dense (tq, D) head-merged slab; W_o is passed
    # pre-transposed (Din, Dout) so this is a plain (M,K)x(K,N) MXU matmul.
    out = jnp.dot(att_acc[...].astype(compute_dtype), wo_ref[...],
                  preferred_element_type=jnp.float32)
    out_ref[0] = (out + bo_ref[...]).astype(out_ref.dtype)


def _fused_attn_kernel_alpha(q_ref, k_ref, v_ref, wo_ref, bo_ref, mb_ref,
                             out_ref, alpha_ref, att_acc, **kw):
    _fused_attn_body(q_ref, k_ref, v_ref, wo_ref, bo_ref, mb_ref,
                     out_ref, alpha_ref, att_acc, **kw)


def _fused_attn_kernel_noalpha(q_ref, k_ref, v_ref, wo_ref, bo_ref, mb_ref,
                               out_ref, att_acc, **kw):
    _fused_attn_body(q_ref, k_ref, v_ref, wo_ref, bo_ref, mb_ref,
                     out_ref, None, att_acc, **kw)


def fused_attention_out_proj(x, wo_t, bo, mask_bias, num_heads, *, tq=256,
                             out_dtype=jnp.float32,
                             compute_dtype=jnp.bfloat16,
                             alpha_dtype=jnp.bfloat16,
                             return_alpha=True,
                             single_buffer_residents=False):
    """x: (B,T,3D) in_proj output; wo_t: (D,D) pre-transposed; bo: (D,);
    mask_bias: (B,1,T) additive f32 bias (0 or -inf)."""
    B, T, D3 = x.shape
    D = D3 // 3
    H = num_heads
    assert D % H == 0
    dh = D // H
    assert D % 128 == 0, "model dim must be a multiple of 128 (lane alignment)"
    tq = _pick_tile(T, tq, 8)
    inv_norm = 1.0 / math.sqrt(dh)

    bo2 = bo.reshape(1, D).astype(jnp.float32)

    def resident(shape, index_map):
        # K / V / W_o never change along the inner grid axis.  On v7x (64 MiB
        # VMEM) single-buffering them halves their footprint with zero lost
        # overlap; on v5e/v6e keep the compiler default (double-buffered).
        if single_buffer_residents:
            return pl.BlockSpec(shape, index_map, pipeline_mode=pl.Buffered(1))
        return pl.BlockSpec(shape, index_map)

    in_specs = [
        # q/k/v are column slabs of x selected purely by BlockSpec index_maps
        # (block size D along the 3D axis -> block indices 0/1/2).
        pl.BlockSpec((1, tq, D), lambda b, i: (b, i, 0)),     # q row tile
        resident((1, T, D), lambda b, i: (b, 0, 1)),          # all k
        resident((1, T, D), lambda b, i: (b, 0, 2)),          # all v
        resident((D, D), lambda b, i: (0, 0)),                # W_o^T (resident)
        pl.BlockSpec((1, D), lambda b, i: (0, 0)),            # b_o
        pl.BlockSpec((1, 1, T), lambda b, i: (b, 0, 0)),      # mask bias
    ]
    out_spec = pl.BlockSpec((1, tq, D), lambda b, i: (b, i, 0))

    kw = dict(num_heads=H, inv_norm=inv_norm, compute_dtype=compute_dtype)
    if return_alpha:
        kernel = functools.partial(_fused_attn_kernel_alpha, **kw)
        out_shape = (jax.ShapeDtypeStruct((B, T, D), out_dtype),
                     jax.ShapeDtypeStruct((B, H, T, T), alpha_dtype))
        out_specs = [out_spec,
                     pl.BlockSpec((1, H, tq, T), lambda b, i: (b, 0, i, 0))]
    else:
        kernel = functools.partial(_fused_attn_kernel_noalpha, **kw)
        out_shape = jax.ShapeDtypeStruct((B, T, D), out_dtype)
        out_specs = out_spec

    res = pl.pallas_call(
        kernel,
        out_shape=out_shape,
        grid_spec=pltpu.PrefetchScalarGridSpec(
            num_scalar_prefetch=0,
            grid=(B, T // tq),
            in_specs=in_specs,
            out_specs=out_specs,
            scratch_shapes=[pltpu.VMEM((tq, D), jnp.float32)],
        ),
        compiler_params=pltpu.CompilerParams(
            dimension_semantics=("parallel", "parallel"),
            vmem_limit_bytes=_vmem_limit_bytes()),
    )(x, x, x, wo_t, bo2, mask_bias)

    if return_alpha:
        return res[0], res[1]
    return res, None


# ----------------------------------------------------------------------------
# Module forward
# ----------------------------------------------------------------------------
def quantized_mha_forward(query, params, num_att_heads, mask=None, *,
                          tq=256, compute_dtype=jnp.bfloat16,
                          alpha_dtype=jnp.bfloat16, return_alpha=True,
                          single_buffer_residents=False):
    """Forward of QuantizedMultiheadAttention (query is key is value).

    query: (B, T, D) float32.  Returns (att_out (B,T,D), alpha (B,H,T,T) or
    None when return_alpha=False).
    mask: optional (B, T) bool, True = masked (filled with -inf before softmax).
    Defaults use the bf16-native MXU path with f32 accumulators; pass
    compute_dtype=alpha_dtype=jnp.float32 for a full-precision run.
    """
    B, T, D = query.shape
    cd = compute_dtype

    # One-time casts / transposes outside the kernels: bf16 weights and
    # activations (halves HBM + VMEM traffic, avoids MXU f32 multipass),
    # (Dout,Din) -> (Din,Dout) so kernels never transpose tiles on the XLU.
    x_in = query.astype(cd)
    w_in_t = params["in_proj_w"].T.astype(cd)                 # (D, 3D)
    w_out_t = params["out_proj_w"].T.astype(cd)               # (D, D)

    # in_proj: D -> 3D, tiled over rows/cols/K, output emitted in compute dtype
    x = linear(x_in, w_in_t, params["in_proj_b"], out_dtype=cd)   # (B, T, 3D)

    if mask is None:
        mask_bias = jnp.zeros((B, 1, T), dtype=jnp.float32)
    else:
        mask_bias = jnp.where(mask, -jnp.inf, 0.0).astype(jnp.float32)
        mask_bias = mask_bias.reshape(B, 1, T)

    # fused: per-head attention + softmax + head merge + out_proj
    out, alpha = fused_attention_out_proj(
        x, w_out_t, params["out_proj_b"], mask_bias, num_att_heads,
        tq=tq, out_dtype=query.dtype, compute_dtype=cd,
        alpha_dtype=alpha_dtype, return_alpha=return_alpha,
        single_buffer_residents=single_buffer_residents)
    return out, alpha


# ----------------------------------------------------------------------------
# Pure-JAX reference for the correctness check
# ----------------------------------------------------------------------------
def _reference(query, params, num_att_heads, mask=None):
    B, T, D = query.shape
    H = num_att_heads
    dh = D // H
    hp = lax.Precision.HIGHEST
    x = jnp.einsum("btd,od->bto", query, params["in_proj_w"],
                   precision=hp) + params["in_proj_b"]
    q, k, v = x[..., :D], x[..., D:2 * D], x[..., 2 * D:]
    q = q.reshape(B, T, H, dh).transpose(0, 2, 1, 3)
    k = k.reshape(B, T, H, dh).transpose(0, 2, 1, 3)
    v = v.reshape(B, T, H, dh).transpose(0, 2, 1, 3)
    scores = jnp.einsum("bhtd,bhsd->bhts", q, k, precision=hp) / math.sqrt(dh)
    if mask is not None:
        scores = jnp.where(mask[:, None, None, :], -jnp.inf, scores)
    alpha = jax.nn.softmax(scores, axis=-1)
    att = jnp.einsum("bhts,bhsd->bhtd", alpha, v, precision=hp)
    att = att.transpose(0, 2, 1, 3).reshape(B, T, D)
    out = jnp.einsum("btd,od->bto", att, params["out_proj_w"],
                     precision=hp) + params["out_proj_b"]
    return out, alpha


# ----------------------------------------------------------------------------
# Main
# ----------------------------------------------------------------------------
if __name__ == "__main__":
    def make_inputs(B, T, D, rng):
        k1, k2, k3, k4, k5 = jax.random.split(rng, 5)
        params = {
            "in_proj_w": 0.05 * jax.random.normal(k1, (3 * D, D), jnp.float32),
            "in_proj_b": 0.05 * jax.random.normal(k2, (3 * D,), jnp.float32),
            "out_proj_w": 0.05 * jax.random.normal(k3, (D, D), jnp.float32),
            "out_proj_b": 0.05 * jax.random.normal(k4, (D,), jnp.float32),
        }
        query = jax.random.normal(k5, (B, T, D), jnp.float32)
        return params, query

    key = jax.random.PRNGKey(0)
    kA, kB = jax.random.split(key)

    # ---------- small shapes, f32 path: strict correctness ------------------
    B, T, D, H = 2, 16, 256, 4
    params, query = make_inputs(B, T, D, kA)

    out, alpha = quantized_mha_forward(query, params, H, mask=None,
                                       compute_dtype=jnp.float32,
                                       alpha_dtype=jnp.float32)
    out = jax.block_until_ready(out)
    alpha = jax.block_until_ready(alpha)
    ref_out, ref_alpha = _reference(query, params, H, mask=None)
    assert out.shape == (B, T, D) and alpha.shape == (B, H, T, T)
    assert jnp.allclose(out, ref_out, atol=5e-3, rtol=5e-3), \
        float(jnp.max(jnp.abs(out - ref_out)))
    assert jnp.allclose(alpha, ref_alpha, atol=5e-3, rtol=5e-3), \
        float(jnp.max(jnp.abs(alpha - ref_alpha)))

    # padding mask (True = masked); no fully-masked rows
    lengths = jnp.array([T, T - 5], dtype=jnp.int32)
    mask = jnp.arange(T)[None, :] >= lengths[:, None]          # (B, T) bool
    out_m, alpha_m = quantized_mha_forward(query, params, H, mask=mask,
                                           compute_dtype=jnp.float32,
                                           alpha_dtype=jnp.float32)
    out_m = jax.block_until_ready(out_m)
    alpha_m = jax.block_until_ready(alpha_m)
    ref_out_m, ref_alpha_m = _reference(query, params, H, mask=mask)
    assert jnp.allclose(out_m, ref_out_m, atol=5e-3, rtol=5e-3), \
        float(jnp.max(jnp.abs(out_m - ref_out_m)))
    assert jnp.allclose(alpha_m, ref_alpha_m, atol=5e-3, rtol=5e-3), \
        float(jnp.max(jnp.abs(alpha_m - ref_alpha_m)))

    # ---------- small shapes, default bf16 path ------------------------------
    out_b, alpha_b = quantized_mha_forward(query, params, H, mask=None)
    out_b = jax.block_until_ready(out_b)
    alpha_b = jax.block_until_ready(alpha_b)
    assert jnp.allclose(out_b, ref_out, atol=8e-2, rtol=8e-2), \
        float(jnp.max(jnp.abs(out_b - ref_out)))
    assert jnp.allclose(alpha_b.astype(jnp.float32), ref_alpha,
                        atol=6e-2, rtol=6e-2), \
        float(jnp.max(jnp.abs(alpha_b.astype(jnp.float32) - ref_alpha)))

    # ---------- medium shapes, default bf16 path: exercises real tiling ------
    Bm, Tm, Dm, Hm = 2, 512, 512, 8
    params_m, query_m = make_inputs(Bm, Tm, Dm, kB)
    out_med, alpha_med = quantized_mha_forward(query_m, params_m, Hm, mask=None)
    out_med = jax.block_until_ready(out_med)
    alpha_med = jax.block_until_ready(alpha_med)
    ref_out_med, ref_alpha_med = _reference(query_m, params_m, Hm, mask=None)
    assert out_med.shape == (Bm, Tm, Dm) and alpha_med.shape == (Bm, Hm, Tm, Tm)
    assert jnp.allclose(out_med, ref_out_med, atol=1e-1, rtol=1e-1), \
        float(jnp.max(jnp.abs(out_med - ref_out_med)))
    assert jnp.allclose(alpha_med.astype(jnp.float32), ref_alpha_med,
                        atol=5e-2, rtol=5e-2), \
        float(jnp.max(jnp.abs(alpha_med.astype(jnp.float32) - ref_alpha_med)))
    row_sums = jnp.sum(alpha_med.astype(jnp.float32), axis=-1)
    assert jnp.allclose(row_sums, 1.0, atol=2e-2), \
        float(jnp.max(jnp.abs(row_sums - 1.0)))

    # ---------- alpha-skipping fast path (no O(B*H*T^2) writeback) -----------
    out_na, _ = quantized_mha_forward(query_m, params_m, Hm, mask=None,
                                      return_alpha=False)
    out_na = jax.block_until_ready(out_na)
    assert out_na.shape == (Bm, Tm, Dm)
    assert jnp.allclose(out_na, ref_out_med, atol=1e-1, rtol=1e-1), \
        float(jnp.max(jnp.abs(out_na - ref_out_med)))

    print("KERNEL_OK")
</pallas_src>

<mosaic_0001>
module attributes {stable_mosaic.version = 11 : i64} {
  func.func @_linear_kernel(%arg0: i32, %arg1: i32, %arg2: i32, %arg3: memref<32x256xf32, #tpu.memory_space<vmem>>, %arg4: memref<256x384xf32, #tpu.memory_space<vmem>>, %arg5: memref<1x384xf32, #tpu.memory_space<vmem>>, %arg6: memref<32x384xf32, #tpu.memory_space<vmem>>, %arg7: memref<32x384xf32, #tpu.memory_space<vmem>>) attributes {dimension_semantics = [#tpu.dimension_semantics<parallel>, #tpu.dimension_semantics<parallel>, #tpu.dimension_semantics<arbitrary>], iteration_bounds = array<i64: 1, 2, 1>, scalar_prefetch = 0 : i64, scratch_operands = 1 : i64, tpu.core_type = #tpu.core_type<tc>, window_params = [{transform_indices = @transform_0, window_bounds = array<i64: 32, 256>}, {transform_indices = @transform_1, window_bounds = array<i64: 256, 384>}, {transform_indices = @transform_2, window_bounds = array<i64: 1, 384>}, {transform_indices = @transform_3, window_bounds = array<i64: 32, 384>}]} {
    %c0_i32 = arith.constant 0 : i32
    %0 = arith.cmpi eq, %arg2, %c0_i32 : i32
    %1 = arith.extui %0 : i1 to i32
    %c0_i32_0 = arith.constant 0 : i32
    %2 = arith.cmpi ne, %1, %c0_i32_0 : i32
    scf.if %2 {
      %cst_10 = arith.constant 0.000000e+00 : f32
      %12 = vector.broadcast %cst_10 : f32 to vector<32x384xf32>
      %c0_11 = arith.constant 0 : index
      %c0_12 = arith.constant 0 : index
      %13 = vector.load %arg7[%c0_11, %c0_12] : memref<32x384xf32, #tpu.memory_space<vmem>>, vector<32x384xf32>
      tpu.vector_store %arg7[%c0_11, %c0_12], %12 {strides = array<i32>} : memref<32x384xf32, #tpu.memory_space<vmem>>, vector<32x384xf32>,
    } else {
    }
    %c0 = arith.constant 0 : index
    %c0_1 = arith.constant 0 : index
    %3 = vector.load %arg7[%c0, %c0_1] : memref<32x384xf32, #tpu.memory_space<vmem>>, vector<32x384xf32>
    %c0_2 = arith.constant 0 : index
    %c0_3 = arith.constant 0 : index
    %4 = vector.load %arg3[%c0_2, %c0_3] : memref<32x256xf32, #tpu.memory_space<vmem>>, vector<32x256xf32>
    %c0_4 = arith.constant 0 : index
    %c0_5 = arith.constant 0 : index
    %5 = vector.load %arg4[%c0_4, %c0_5] : memref<256x384xf32, #tpu.memory_space<vmem>>, vector<256x384xf32>
    %cst = arith.constant dense<0.000000e+00> : vector<32x384xf32>
    %6 = tpu.matmul %4, %5, %cst {dimension_numbers = #tpu.dot_dimension_numbers<[1], [0], [0], [1], [0, 0, 1, 1], [], []>} : vector<32x256xf32>, vector<256x384xf32>, vector<32x384xf32> -> vector<32x384xf32>
    %7 = arith.addf %3, %6 : vector<32x384xf32>
    %c0_6 = arith.constant 0 : index
    %c0_7 = arith.constant 0 : index
    %8 = vector.load %arg7[%c0_6, %c0_7] : memref<32x384xf32, #tpu.memory_space<vmem>>, vector<32x384xf32>
    tpu.vector_store %arg7[%c0_6, %c0_7], %7 {strides = array<i32>} : memref<32x384xf32, #tpu.memory_space<vmem>>, vector<32x384xf32>,
    %c0_i32_8 = arith.constant 0 : i32
    %9 = arith.cmpi eq, %arg2, %c0_i32_8 : i32
    %10 = arith.extui %9 : i1 to i32
    %c0_i32_9 = arith.constant 0 : i32
    %11 = arith.cmpi ne, %10, %c0_i32_9 : i32
    scf.if %11 {
      %c0_10 = arith.constant 0 : index
      %c0_11 = arith.constant 0 : index
      %12 = vector.load %arg7[%c0_10, %c0_11] : memref<32x384xf32, #tpu.memory_space<vmem>>, vector<32x384xf32>
      %c0_12 = arith.constant 0 : index
      %c0_13 = arith.constant 0 : index
      %13 = vector.load %arg5[%c0_12, %c0_13] : memref<1x384xf32, #tpu.memory_space<vmem>>, vector<1x384xf32>
      %14 = vector.broadcast %13 : vector<1x384xf32> to vector<32x384xf32>
      %15 = arith.addf %12, %14 : vector<32x384xf32>
      %c0_14 = arith.constant 0 : index
      %c0_15 = arith.constant 0 : index
      %16 = vector.load %arg6[%c0_14, %c0_15] : memref<32x384xf32, #tpu.memory_space<vmem>>, vector<32x384xf32>
      tpu.vector_store %arg6[%c0_14, %c0_15], %15 {strides = array<i32>} : memref<32x384xf32, #tpu.memory_space<vmem>>, vector<32x384xf32>,
    } else {
    }
    return
  }
  func.func @transform_0(%arg0: i32, %arg1: i32, %arg2: i32) -> (i32, i32) {
    %c0_i32 = arith.constant 0 : i32
    return %arg0, %arg2 : i32, i32
  }
  func.func @transform_1(%arg0: i32, %arg1: i32, %arg2: i32) -> (i32, i32) {
    %c0_i32 = arith.constant 0 : i32
    return %arg2, %arg1 : i32, i32
  }
  func.func @transform_2(%arg0: i32, %arg1: i32, %arg2: i32) -> (i32, i32) {
    %c0_i32 = arith.constant 0 : i32
    %c0_i32_0 = arith.constant 0 : i32
    return %c0_i32, %arg1 : i32, i32
  }
  func.func @transform_3(%arg0: i32, %arg1: i32, %arg2: i32) -> (i32, i32) {
    %c0_i32 = arith.constant 0 : i32
    return %arg0, %arg1 : i32, i32
  }
}

</mosaic_0001>

<bundles_post_ra>
// kernel: tpu_custom_call.1
= control target key start
LH: loop header
LB: loop body
LE: loop exit
PB: predicated region body
PF: predicated region fallthrough
CT: control target
= control target key end

     0   :  { %s1641_s0 = inlined_call_operand.hbm [shape: f32[32,256], index: 0, kind: input, shape index: {}]   ;;  %s1642_s1 = inlined_call_operand.hbm [shape: f32[256,768], index: 1, kind: input, shape index: {}]   ;;  %s1643_s2 = inlined_call_operand.hbm [shape: f32[1,768], index: 2, kind: input, shape index: {}]   ;;  %s1644_s3 = inlined_call_operand.hbm [shape: f32[32,768], index: 3, kind: output, shape index: {}]  }
   0x1   :  { %1653 = sst [smem:[#allocation14_spill]] %s1642_s1 }
   0x2   :  { %8 = vsyncpa [#allocation4], 0 }
   0x3   :  { %9 = vsyncpa [#allocation7], 0 }
   0x4   :  { %11 = vsyncpa [#allocation7 + $0x1], 0 }
   0x5   :  { %12 = vsyncpa [#allocation5], 0 }
   0x6   :  { %14 = vsyncpa [#allocation5 + $0x1], 0  ;;  %s1269_s12 = smov 0   ;;  %s1271_s13 = smov 0  }
   0x7   :  { %s1273_s14 = smov 0   ;;  %s1275_s15 = smov 0  }
   0x8   :  { %s1277_s16 = smov 0   ;;  %s1279_s17 = smov 0  }
   0x9 LB: > { %s35_s18 = sadd.s32 1, %s1231_s16  ;;  %s76_s19 = sadd.s32 1, %s1223_s14  ;;  %s1235_s17 = sphi %s1279_s17, %s20_s17   ;;  %s1231_s16 = sphi %s1277_s16, %s1677_s16   ;;  %s1227_s15 = sphi %s1275_s15, %s1676_s15   ;;  %s1223_s14 = sphi %s1273_s14, %s1675_s14   ;;  %s1219_s13 = sphi %s1271_s13, %s1674_s13   ;;  %s1215_s12 = sphi %s1269_s12, %s1673_s12  }
   0xa   : > { %p37_p0 = scmp.ge.s32.totalorder %s35_s18, 2  ;;  %p83_p1 = scmp.ne.s32.totalorder %s1223_s14, %s1219_s13 }
   0xb   : > { %p84_p2 = scmp.eq.s32.totalorder %s1235_s17, 0  ;;  %p1001_p5 = scmp.lt.s32.totalorder %s1235_s17, 2 }
   0xc   : > { %s1679_s18 = smov (%p37_p0, %s35_s18), 0  ;;  %s186_s21 = sand.u32 1, %s1235_s17  }
   0xd   : > { %1654 = sst [smem:[#allocation13_spill]] %s1679_s18  ;;  %p85_p4 = por %p84_p2, %p83_p1 }
   0xe   : > { %s72_s20 = ssub.s32 %s1231_s16, %s1679_s18  ;;  %s188_s22 = sand.u32 1, %s1223_s14  }
   0xf   : > { %p74_p6 = scmp.eq.s32.totalorder %s72_s20, 0  ;;  %s827_s23 = smul.u32 384, %s1231_s16 }
  0x10   : > { %s970_s25 = smul.u32 768, %s188_s22  ;;  %s1655_s1 = sld [smem:[#allocation14_spill]] }
  0x11   : > { %s1317_s24 = scalar_select %p74_p6, %s1223_s14, %s76_s19  }
  0x12   : > { %p1326_p7 = pnand %p1001_p5, %p85_p4  ;;  %s190_s30 = scalar_lea.vmem [#allocation6], %s970_s25 }
  0x13   : > { %s200_s4 = sshll.u32 %s190_s30, 4  ;;  %s1332_s5 = scalar_lea.sflag [#allocation7], %s186_s21  ;;  %s1330_s4 = int_to_ptr.vmem [resolvable:$true] %s200_s4 }
  0x14   : > { %s1656_s29 = scalar_select %p1326_p7, 1, 0 }
  0x15   : > { %p1647_p9 = pneg %p1326_p7 }
  0x16   : > { %s1324_s28 = scalar_lea.hbm %s1655_s1, %s827_s23  ;;  %s1066_s9 = scalar_lea.hbm %s1655_s1, 24576 }
  0x17   : > { %s1061_s6 = scalar_lea.hbm %s1324_s28, 12288  ;;  %p1067_p12 = scmp.lt.u32.totalorder %s1324_s28, %s1655_s1 }
  0x18   : > { %p1062_p8 = scmp.ne.s32.totalorder %s1324_s28, %s1061_s6  ;;  %p1068_p13 = scmp.lt.u32.totalorder %s1066_s9, %s1061_s6 }
  0x19   : > { %p1070_p2 = scmp.lt.u32.totalorder %s1061_s6, %s1324_s28 }
  0x1a   : > { %p1064_p10 = pnand %p1647_p9, %p1062_p8  ;;  %p1069_p0 = por %p1068_p13, %p1067_p12 }
  0x1c   : > { %p1065_p11 = pneg %p1064_p10  ;;  %p1071_p4 = por %p1070_p2, %p1069_p0 }
  0x1e   : > { %p1072_p5 = pnand %p1071_p4, %p1065_p11 }
  0x20   : > { %1075 = shalt.err (!%p1072_p5)
}
  0x21   : > { %s1076_s19 = scalar_lea.vmem %s1330_s4, 12288  ;;  %s1237_s20 = smov [#allocation6]  }
  0x22   : > { %p1077_p6 = scmp.ne.s32.totalorder %s1330_s4, %s1076_s19  ;;  %s1081_s21 = sshll.u32 %s1237_s20, 4  ;;  %s1082_s21 = int_to_ptr.vmem [resolvable:$false] %s1081_s21 }
  0x23   : > { %s1083_s23 = scalar_lea.vmem %s1082_s21, 24576  ;;  %p1084_p3 = scmp.lt.s32.totalorder %s1330_s4, %s1082_s21 }
  0x24   : > { %p1079_p8 = pnand %p1077_p6, %p1647_p9  ;;  %p1085_p12 = scmp.lt.s32.totalorder %s1083_s23, %s1076_s19 }
  0x26   : > { %p1080_p10 = pneg %p1079_p8  ;;  %p1086_p13 = por %p1085_p12, %p1084_p3 }
  0x28   : > { %p1087_p0 = pnand %p1086_p13, %p1080_p10 }
  0x2a   : > { %1090 = shalt.err (!%p1087_p0)
}
  0x2b   : > { %s1238_s25 = smov 768   ;;  %s1239_s26 = smov 384  }
  0x2c   : > { %s1240_s27 = smov 24   ;;  %s1361_s30 = sadd.s32 4294967295, %s1235_s17  }
  0x2d   : > { %992 = dma.hbm_to_vmem [thread:$0]  (!%p1326_p7), %s1324_s28, 12288, %s1330_s4, %s1332_s5, %s1238_s25, %s1239_s26, %s1240_s27  }
  0x2e   : > { %s816_s6 = sadd.s32 4294967294, %s1235_s17   ;;  %p89_p3 = scmp.ne.s32.totalorder %s1219_s13, %s1215_s12 }
  0x2f   : > { %p1646_p11 = scmp.eq.s32.totalorder %s1361_s30, 0  ;;  %p141_p2 = scmp.eq.s32.totalorder %s1361_s30, 1 }
  0x30   : > { %p147_p4 = scmp.eq.s32.totalorder %s816_s6, 1  ;;  %p817_p6 = scmp.ge.s32.totalorder %s1235_s17, 1 }
  0x31   : > { %p1370_p5 = por %p1646_p11, %p89_p3  ;;  %p1378_p8 = por %p141_p2, %p83_p1 }
  0x32   : > { %p1382_p10 = por %p147_p4, %p89_p3  ;;  %p154_p12 = scmp.lt.s32.totalorder %s1235_s17, 3 }
  0x33   : > { %s1657_s7 = scalar_select %p1370_p5, 1, 0 }
  0x34   : > { %s1658_s28 = scalar_select %p1378_p8, 1, 0 }
  0x35   : > { %s1659_s4 = scalar_select %p1382_p10, 1, 0 }
  0x36   : > { %p1387_p13 = pnand %p817_p6, %p154_p12  ;;  %s1241_s9 = smov [#allocation3]  }
  0x37   : > { %s172_s10 = sshll.u32 %s1241_s9, 4  ;;  %s971_s11 = smul.u32 3, %s188_s22  ;;  %s1391_s10 = int_to_ptr.vmem [resolvable:$true] %s172_s10 }
  0x38   : > { %s1660_s8 = scalar_select %p1387_p13, 1, 0 }
  0x39   : > { %p985_p0 = pneg %p1387_p13  ;;  %s828_s19 = smul.u32 48, %s1231_s16 }
  0x3a   : > { %s214_s26 = scalar_lea.vmem [#allocation8], %s971_s11  ;;  %s1091_s22 = scalar_lea.hbm %s1641_s0, 1024 }
  0x3b   : > { %p1400_p1 = pnand %p985_p0, %p1646_p11  ;;  %s1407_s25 = scalar_lea.hbm %s1643_s2, %s828_s19 }
  0x3c   : > { %s222_s27 = sshll.u32 %s214_s26, 4  ;;  %p1092_p3 = scmp.ne.s32.totalorder %s1641_s0, %s1091_s22  ;;  %s1409_s27 = int_to_ptr.vmem [resolvable:$true] %s222_s27 }
  0x3d   : > { %p1093_p2 = pneg %p1400_p1  ;;  %p1098_p12 = scmp.lt.u32.totalorder %s1091_s22, %s1641_s0 }
  0x3f   : > { %p1094_p4 = pnand %p1093_p2, %p1092_p3 }
  0x41   : > { %p1095_p6 = pneg %p1094_p4 }
  0x43   : > { %p1100_p0 = pnand %p1098_p12, %p1095_p6 }
  0x45   : > { %1103 = shalt.err (!%p1100_p0)
}
  0x46   : > { %s1104_s11 = scalar_lea.vmem %s1391_s10, 1024  ;;  %p1112_p8 = scmp.lt.s32.totalorder %s1391_s10, %s1391_s10 }
  0x47   : > { %p1105_p11 = scmp.ne.s32.totalorder %s1391_s10, %s1104_s11  ;;  %p1113_p5 = scmp.lt.s32.totalorder %s1104_s11, %s1104_s11 }
  0x49   : > { %p1107_p9 = pnand %p1105_p11, %p1093_p2  ;;  %p1114_p13 = por %p1113_p5, %p1112_p8 }
  0x4b   : > { %p1108_p10 = pneg %p1107_p9 }
  0x4d   : > { %p1115_p7 = pnand %p1114_p13, %p1108_p10 }
  0x4f   : > { %1118 = shalt.err (!%p1115_p7)
}
  0x50   : > { %s1242_s1 = smov 256   ;;  %s1243_s18 = smov 16  }
  0x51   : > { %988 = dma.hbm_to_vmem [thread:$0]  (!%p1400_p1), %s1641_s0, 1024, %s1391_s10, [#allocation4], %s1242_s1, %s1242_s1, %s1243_s18  }
  0x52   : > { %s1119_s6 = scalar_lea.hbm %s1407_s25, 48  ;;  %p1662_p11 = scmp.ne.s32.totalorder %s1656_s29, 0 }
  0x53   : > { %p1120_p9 = scmp.ne.s32.totalorder %s1407_s25, %s1119_s6  ;;  %s1124_s21 = scalar_lea.hbm %s1643_s2, 96 }
  0x54   : > { %p1663_p5 = pneg %p1662_p11  ;;  %p1125_p10 = scmp.lt.u32.totalorder %s1407_s25, %s1643_s2 }
  0x55   : > { %p1126_p13 = scmp.lt.u32.totalorder %s1124_s21, %s1119_s6  ;;  %p1128_p2 = scmp.lt.u32.totalorder %s1119_s6, %s1407_s25 }
  0x56   : > { %p1122_p8 = pnand %p1120_p9, %p1663_p5 }
  0x57   : > { %p1127_p3 = por %p1126_p13, %p1125_p10 }
  0x58   : > { %p1123_p7 = pneg %p1122_p8 }
  0x59   : > { %p1129_p4 = por %p1128_p2, %p1127_p3 }
  0x5b   : > { %p1130_p6 = pnand %p1129_p4, %p1123_p7 }
  0x5d   : > { %1133 = shalt.err (!%p1130_p6)
}
  0x5e   : > { %s1134_s10 = scalar_lea.vmem %s1409_s27, 48  ;;  %p1664_p12 = pmov %p1663_p5 }
  0x5f   : > { %p1135_p1 = scmp.ne.s32.totalorder %s1409_s27, %s1134_s10  ;;  %s1244_s20 = smov [#allocation8]  }
  0x60   : > { %s1139_s1 = sshll.u32 %s1244_s20, 4  ;;  %s1140_s1 = int_to_ptr.vmem [resolvable:$false] %s1139_s1 }
  0x61   : > { %p1137_p0 = pnand %p1135_p1, %p1664_p12  ;;  %s1141_s18 = scalar_lea.vmem %s1140_s1, 96 }
  0x62   : > { %p1142_p5 = scmp.lt.s32.totalorder %s1409_s27, %s1140_s1  ;;  %p1143_p8 = scmp.lt.s32.totalorder %s1141_s18, %s1134_s10 }
  0x63   : > { %p1138_p9 = pneg %p1137_p0 }
  0x64   : > { %p1144_p10 = por %p1143_p8, %p1142_p5 }
  0x66   : > { %p1145_p13 = pnand %p1144_p10, %p1138_p9 }
  0x68   : > { %1148 = shalt.err (!%p1145_p13)
}
  0x69   : > { %995 = dma.hbm_to_vmem [thread:$0]  (!%p1662_p11), %s1407_s25, 48, %s1409_s27, %s1332_s5  }
  0x6a   : > { %p1665_p7 = scmp.ne.s32.totalorder %s1660_s8, 0 }
  0x6b   : > { %p1666_p3 = scmp.eq.s32.totalorder (!%p1665_p7), %s1361_s30, 0 }
  0x6c   : > { %231 = sbr.rel (%p1665_p7) target bundleno = 431 (0x1af), region = 32 }
  0x73   : > { %1202 = dma.done.wait (%p1666_p3), [#allocation4], 1024   ;;  %p1667_p2 = pmov %p1666_p3 }
  0x74   : > { %s237_s19 = sand.u32 1, %s1361_s30   ;;  %s1464_s26 = sand.u32 1, %s1219_s13  }
  0x75   : > { %1204 = vsyncadd (%p1667_p2), [#allocation4], 4294966272  ;;  %s972_s29 = smul.u32 768, %s1464_s26  ;;  %s238_s6 = scalar_lea.sflag [#allocation7], %s237_s19 }
  0x76   : > { %p1668_p11 = scmp.ne.s32.totalorder %s1657_s7, 0 }
  0x77   : > { %s1467_s9 = scalar_lea.vmem [#allocation6], %s972_s29 }
  0x78   : > { %1206 = dma.done.wait (%p1668_p11), %s238_s6, 12336  }
  0x79   : > { %1208 = vsyncadd (%p1668_p11), %s238_s6, 4294954960  ;;  %v322_v0 = vld [vmem:[%s1467_s9 + $0x8] sm:$0xff]  ;;  %v325_v1 = vld [vmem:[%s1467_s9 + $0x20] sm:$0xff]  ;;  %s973_s5 = smul.u32 3, %s1464_s26  ;;  %p1669_p6 = scmp.ne.s32.totalorder %s1658_s28, 0 }
  0x7a   : > { %v321_v2 = vld [vmem:[%s1467_s9] sm:$0xff]  ;;  %v874_v3 = vpack.c.bf16 %v325_v1, %v322_v0  ;;  %v324_v4 = vld [vmem:[%s1467_s9 + $0x18] sm:$0xff]  ;;  %v331_v6 = vld [vmem:[%s1467_s9 + $0x50] sm:$0xff]  ;;  %s974_s7 = smul.u32 96, %s1464_s26  ;;  %s1245_s10 = smov [#allocation9]  }
  0x7b   : > { %v328_v5 = vld [vmem:[%s1467_s9 + $0x38] sm:$0xff]  ;;  %v876_v7 = vpack.c.bf16 %v324_v4, %v321_v2  ;;  %v327_v9 = vld [vmem:[%s1467_s9 + $0x30] sm:$0xff]  ;;  %v330_v10 = vld [vmem:[%s1467_s9 + $0x48] sm:$0xff]  ;;  %s250_s30 = scalar_lea.vmem [#allocation8], %s973_s5  ;;  %s829_s25 = smul.u32 384, %s1227_s15 }
  0x7c   : > { %v878_v8 = vpack.c.bf16 %v331_v6, %v328_v5  ;;  %v334_v11 = vld [vmem:[%s1467_s9 + $0x68] sm:$0xff]  ;;  %875 = vmatprep.subr.bf16.mxu0 %v874_v3  ;;  %v337_v12 = vld [vmem:[%s1467_s9 + $0x80] sm:$0xff]  ;;  %v880_v13 = vpack.c.bf16 %v330_v10, %v327_v9  ;;  %v336_v16 = vld [vmem:[%s1467_s9 + $0x78] sm:$0xff]  ;;  %s1571_s8 = scalar_lea.vmem [#allocation9], %s974_s7  ;;  %s672_s15 = scalar_lea.sflag [#allocation5], %s1464_s26 }
  0x7d   : > { %877 = vmatpush1.bf16.msra.mxu0 %v876_v7  ;;  %v882_v14 = vpack.c.bf16 %v337_v12, %v334_v11  ;;  %v333_v15 = vld [vmem:[%s1467_s9 + $0x60] sm:$0xff]  ;;  %v340_v17 = vld [vmem:[%s1467_s9 + $0x98] sm:$0xff]  ;;  %v343_v18 = vld [vmem:[%s1467_s9 + $0xb0] sm:$0xff]  ;;  %s688_s27 = sshll.u32 %s1571_s8, 4  ;;  %s1588_s23 = scalar_lea.hbm %s1644_s3, %s829_s25  ;;  %s1590_s27 = int_to_ptr.vmem [resolvable:$true] %s688_s27 }
  0x7e   : > { %879 = vmatprep.subr.bf16.mxu0 %v878_v8  ;;  %v884_v19 = vpack.c.bf16 %v336_v16, %v333_v15  ;;  %v886_v20 = vpack.c.bf16 %v343_v18, %v340_v17  ;;  %v339_v21 = vld [vmem:[%s1467_s9 + $0x90] sm:$0xff]  ;;  %v342_v22 = vld [vmem:[%s1467_s9 + $0xa8] sm:$0xff]  ;;  %v349_v24 = vld [vmem:[%s1467_s9 + $0xe0] sm:$0xff]  ;;  %s1149_s11 = scalar_lea.vmem %s1590_s27, 1536  ;;  %s1153_s20 = sshll.u32 %s1245_s10, 4  ;;  %s1154_s20 = int_to_ptr.vmem [resolvable:$false] %s1153_s20 }
  0x7f   : > { %v346_v23 = vld [vmem:[%s1467_s9 + $0xc8] sm:$0xff]  ;;  %v371_v25 = vld [vmem:[%s1467_s9 + $0x190] sm:$0xff]  ;;  %v888_v29 = vpack.c.bf16 %v342_v22, %v339_v21  ;;  %v345_v30 = vld [vmem:[%s1467_s9 + $0xc0] sm:$0xff]  ;;  %p1150_p4 = scmp.ne.s32.totalorder %s1590_s27, %s1149_s11  ;;  %s1155_s1 = scalar_lea.vmem %s1154_s20, 3072 }
  0x80   : > { %v374_v26 = vld [vmem:[%s1467_s9 + $0x1a8] sm:$0xff]  ;;  %v323_v27 = vld [vmem:[%s1467_s9 + $0x10] sm:$0xff]  ;;  %v348_v31 = vld [vmem:[%s1467_s9 + $0xd8] sm:$0xff]  ;;  %v890_v34 = vpack.c.bf16 %v349_v24, %v346_v23  ;;  %p1156_p0 = scmp.lt.s32.totalorder %s1590_s27, %s1154_s20  ;;  %p1157_p9 = scmp.lt.s32.totalorder %s1155_s1, %s1149_s11 }
  0x81   : > { %881 = vmatpush1.bf16.msra.mxu0 %v880_v13  ;;  %v326_v28 = vld [vmem:[%s1467_s9 + $0x28] sm:$0xff]  ;;  %v938_v32 = vpack.c.bf16 %v374_v26, %v371_v25  ;;  %v352_v35 = vld [vmem:[%s1467_s9 + $0xf8] sm:$0xff]  ;;  %v377_v36 = vld [vmem:[%s1467_s9 + $0x1c0] sm:$0xff]  ;;  %v892_v43 = vpack.c.bf16 %v348_v31, %v345_v30  ;;  %p1151_p1 = pnand %p1150_p4, %p1669_p6 }
  0x82   : > { %883 = vmatprep.subr.bf16.mxu0 %v882_v14  ;;  %v940_v33 = vpack.c.bf16 %v326_v28, %v323_v27  ;;  %v380_v37 = vld [vmem:[%s1467_s9 + $0x1d8] sm:$0xff]  ;;  %v355_v38 = vld [vmem:[%s1467_s9 + $0x110] sm:$0xff]  ;;  %v329_v40 = vld [vmem:[%s1467_s9 + $0x40] sm:$0xff]  ;;  %p1158_p5 = por %p1157_p9, %p1156_p0 }
  0x83   : > { %939 = vmatprep.subr.bf16.mxu1 %v938_v32  ;;  %v942_v39 = vpack.c.bf16 %v380_v37, %v377_v36  ;;  %v332_v41 = vld [vmem:[%s1467_s9 + $0x58] sm:$0xff]  ;;  %v383_v44 = vld [vmem:[%s1467_s9 + $0x1f0] sm:$0xff]  ;;  %v386_v45 = vld [vmem:[%s1467_s9 + $0x208] sm:$0xff]  ;;  %v894_v47 = vpack.c.bf16 %v355_v38, %v352_v35  ;;  %p1152_p12 = pneg %p1151_p1 }
  0x84   : > { %941 = vmatpush3.bf16.msra.mxu1 %v940_v33  ;;  %v944_v42 = vpack.c.bf16 %v332_v41, %v329_v40  ;;  %v335_v46 = vld [vmem:[%s1467_s9 + $0x70] sm:$0xff]  ;;  %v354_v49 = vld [vmem:[%s1467_s9 + $0x108] sm:$0xff]  ;;  %v946_v50 = vpack.c.bf16 %v386_v45, %v383_v44  ;;  %v361_v53 = vld [vmem:[%s1467_s9 + $0x140] sm:$0xff] }
  0x85   : > { %885 = vmatpush1.bf16.msra.mxu0 %v884_v19  ;;  %943 = vmatprep.subr.bf16.mxu1 %v942_v39  ;;  %v351_v48 = vld [vmem:[%s1467_s9 + $0xf0] sm:$0xff]  ;;  %v338_v51 = vld [vmem:[%s1467_s9 + $0x88] sm:$0xff]  ;;  %v389_v54 = vld [vmem:[%s1467_s9 + $0x220] sm:$0xff]  ;;  %p1159_p8 = pnand %p1158_p5, %p1152_p12 }
  0x86   : > { %887 = vmatprep.subr.bf16.mxu0 %v886_v20  ;;  %v358_v52 = vld [vmem:[%s1467_s9 + $0x128] sm:$0xff]  ;;  %v948_v55 = vpack.c.bf16 %v338_v51, %v335_v46  ;;  %v392_v56 = vld [vmem:[%s1467_s9 + $0x238] sm:$0xff]  ;;  %v896_v57 = vpack.c.bf16 %v354_v49, %v351_v48  ;;  %v357_v58 = vld [vmem:[%s1467_s9 + $0x120] sm:$0xff] }
  0x87   : > { %v950_v59 = vpack.c.bf16 %v392_v56, %v389_v54  ;;  %v341_v60 = vld [vmem:[%s1467_s9 + $0xa0] sm:$0xff]  ;;  %v344_v61 = vld [vmem:[%s1467_s9 + $0xb8] sm:$0xff]  ;;  %v898_v62 = vpack.c.bf16 %v361_v53, %v358_v52  ;;  %v395_v0 = vld [vmem:[%s1467_s9 + $0x250] sm:$0xff] }
  0x88   : > { %945 = vmatpush3.bf16.msra.mxu1 %v944_v42  ;;  %v360_v63 = vld [vmem:[%s1467_s9 + $0x138] sm:$0xff]  ;;  %v398_v1 = vld [vmem:[%s1467_s9 + $0x268] sm:$0xff]  ;;  %v367_v3 = vld [vmem:[%s1467_s9 + $0x170] sm:$0xff]  ;;  %v952_v4 = vpack.c.bf16 %v344_v61, %v341_v60 }
  0x89   : > { %889 = vmatpush1.bf16.msra.mxu0 %v888_v29  ;;  %947 = vmatprep.subr.bf16.mxu1 %v946_v50  ;;  %v364_v2 = vld [vmem:[%s1467_s9 + $0x158] sm:$0xff]  ;;  %v900_v5 = vpack.c.bf16 %v360_v63, %v357_v58  ;;  %v363_v6 = vld [vmem:[%s1467_s9 + $0x150] sm:$0xff]  ;;  %v954_v7 = vpack.c.bf16 %v398_v1, %v395_v0  ;;  %v350_v9 = vld [vmem:[%s1467_s9 + $0xe8] sm:$0xff] }
  0x8a   : > { %891 = vmatprep.subr.bf16.mxu0 %v890_v34  ;;  %v347_v8 = vld [vmem:[%s1467_s9 + $0xd0] sm:$0xff]  ;;  %v902_v10 = vpack.c.bf16 %v367_v3, %v364_v2  ;;  %v366_v11 = vld [vmem:[%s1467_s9 + $0x168] sm:$0xff]  ;;  %v401_v12 = vld [vmem:[%s1467_s9 + $0x280] sm:$0xff] }
  0x8b   : > { %v404_v13 = vld [vmem:[%s1467_s9 + $0x298] sm:$0xff]  ;;  %v370_v14 = vld [vmem:[%s1467_s9 + $0x188] sm:$0xff]  ;;  %v373_v15 = vld [vmem:[%s1467_s9 + $0x1a0] sm:$0xff]  ;;  %v956_v16 = vpack.c.bf16 %v350_v9, %v347_v8  ;;  %v904_v17 = vpack.c.bf16 %v366_v11, %v363_v6 }
  0x8c   : > { %949 = vmatpush3.bf16.msra.mxu1 %v948_v55  ;;  %v369_v18 = vld [vmem:[%s1467_s9 + $0x180] sm:$0xff]  ;;  %v958_v19 = vpack.c.bf16 %v404_v13, %v401_v12  ;;  %v356_v21 = vld [vmem:[%s1467_s9 + $0x118] sm:$0xff]  ;;  %v906_v22 = vpack.c.bf16 %v373_v15, %v370_v14  ;;  %v407_v24 = vld [vmem:[%s1467_s9 + $0x2b0] sm:$0xff] }
  0x8d   : > { %893 = vmatpush1.bf16.msra.mxu0 %v892_v43  ;;  %951 = vmatprep.subr.bf16.mxu1 %v950_v59  ;;  %v353_v20 = vld [vmem:[%s1467_s9 + $0x100] sm:$0xff]  ;;  %v372_v23 = vld [vmem:[%s1467_s9 + $0x198] sm:$0xff]  ;;  %v410_v25 = vld [vmem:[%s1467_s9 + $0x2c8] sm:$0xff] }
  0x8e   : > { %895 = vmatprep.subr.bf16.mxu0 %v894_v47  ;;  %v376_v26 = vld [vmem:[%s1467_s9 + $0x1b8] sm:$0xff]  ;;  %v379_v27 = vld [vmem:[%s1467_s9 + $0x1d0] sm:$0xff]  ;;  %v960_v28 = vpack.c.bf16 %v356_v21, %v353_v20  ;;  %v314_v29 = vld [vmem:[#allocation3 + $0x8] sm:$0xff]  ;;  %v908_v30 = vpack.c.bf16 %v372_v23, %v369_v18  ;;  %v962_v32 = vpack.c.bf16 %v410_v25, %v407_v24  ;;  %v632_v24 = vlaneseq }
  0x8f   : > { %v375_v31 = vld [vmem:[%s1467_s9 + $0x1b0] sm:$0xff]  ;;  %v362_v34 = vld [vmem:[%s1467_s9 + $0x148] sm:$0xff]  ;;  %v910_v35 = vpack.c.bf16 %v379_v27, %v376_v26  ;;  %v413_v37 = vld [vmem:[%s1467_s9 + $0x2e0] sm:$0xff]  ;;  %570 = vmatprep.mubr.f32.mxu1 %v314_v29  ;;  %481 = vmatprep.mubr.f32.mxu0 %v314_v29 }
  0x90   : > { %953 = vmatpush3.bf16.msra.mxu1 %v952_v4  ;;  %v359_v33 = vld [vmem:[%s1467_s9 + $0x130] sm:$0xff]  ;;  %v378_v36 = vld [vmem:[%s1467_s9 + $0x1c8] sm:$0xff]  ;;  %v416_v38 = vld [vmem:[%s1467_s9 + $0x2f8] sm:$0xff]  ;;  %v633_v25 = vshrl.u32 %v632_v24, 7 }
  0x91   : > { %897 = vmatpush1.bf16.msra.mxu0 %v896_v57  ;;  %955 = vmatprep.subr.bf16.mxu1 %v954_v7  ;;  %v382_v39 = vld [vmem:[%s1467_s9 + $0x1e8] sm:$0xff]  ;;  %v385_v40 = vld [vmem:[%s1467_s9 + $0x200] sm:$0xff]  ;;  %v964_v41 = vpack.c.bf16 %v362_v34, %v359_v33  ;;  %v912_v42 = vpack.c.bf16 %v378_v36, %v375_v31  ;;  %v966_v43 = vpack.c.bf16 %v416_v38, %v413_v37  ;;  %v368_v45 = vld [vmem:[%s1467_s9 + $0x178] sm:$0xff] }
  0x92   : > { %899 = vmatprep.subr.bf16.mxu0 %v898_v62  ;;  %v365_v44 = vld [vmem:[%s1467_s9 + $0x160] sm:$0xff]  ;;  %v914_v46 = vpack.c.bf16 %v385_v40, %v382_v39  ;;  %v384_v48 = vld [vmem:[%s1467_s9 + $0x1f8] sm:$0xff]  ;;  %v391_v50 = vld [vmem:[%s1467_s9 + $0x230] sm:$0xff]  ;;  %v642_v26 = vsub.s32 2, %v633_v25 }
  0x93   : > { %v381_v47 = vld [vmem:[%s1467_s9 + $0x1e0] sm:$0xff]  ;;  %v388_v49 = vld [vmem:[%s1467_s9 + $0x218] sm:$0xff]  ;;  %v968_v51 = vpack.c.bf16 %v368_v45, %v365_v44  ;;  %v387_v54 = vld [vmem:[%s1467_s9 + $0x210] sm:$0xff]  ;;  %v638_v45 = vsub.s32 1, %v633_v25 }
  0x94   : > { %957 = vmatpush3.bf16.msra.mxu1 %v956_v16  ;;  %v916_v52 = vpack.c.bf16 %v384_v48, %v381_v47  ;;  %v918_v53 = vpack.c.bf16 %v391_v50, %v388_v49  ;;  %v390_v55 = vld [vmem:[%s1467_s9 + $0x228] sm:$0xff]  ;;  %v397_v57 = vld [vmem:[%s1467_s9 + $0x260] sm:$0xff]  ;;  %v316_v60 = vld [vmem:[#allocation3 + $0x18] sm:$0xff] }
  0x95   : > { %901 = vmatpush1.bf16.msra.mxu0 %v900_v5  ;;  %959 = vmatprep.subr.bf16.mxu1 %v958_v19  ;;  %v394_v56 = vld [vmem:[%s1467_s9 + $0x248] sm:$0xff]  ;;  %v313_v58 = vld [vmem:[#allocation3] sm:$0xff]  ;;  %v920_v59 = vpack.c.bf16 %v390_v55, %v387_v54  ;;  %v396_v63 = vld [vmem:[%s1467_s9 + $0x258] sm:$0xff] }
  0x96   : > { %903 = vmatprep.subr.bf16.mxu0 %v902_v10  ;;  %v922_v61 = vpack.c.bf16 %v397_v57, %v394_v56  ;;  %v393_v62 = vld [vmem:[%s1467_s9 + $0x240] sm:$0xff]  ;;  %v400_v0 = vld [vmem:[%s1467_s9 + $0x278] sm:$0xff]  ;;  %v403_v1 = vld [vmem:[%s1467_s9 + $0x290] sm:$0xff] }
  0x97   : > { %v315_v2 = vld [vmem:[#allocation3 + $0x10] sm:$0xff]  ;;  %v924_v3 = vpack.c.bf16 %v396_v63, %v393_v62  ;;  %v318_v4 = vld [vmem:[#allocation3 + $0x28] sm:$0xff]  ;;  %v926_v5 = vpack.c.bf16 %v403_v1, %v400_v0  ;;  %v409_v9 = vld [vmem:[%s1467_s9 + $0x2c0] sm:$0xff] }
  0x98   : > { %961 = vmatpush3.bf16.msra.mxu1 %v960_v28  ;;  %v399_v6 = vld [vmem:[%s1467_s9 + $0x270] sm:$0xff]  ;;  %v402_v7 = vld [vmem:[%s1467_s9 + $0x288] sm:$0xff]  ;;  %v317_v10 = vld [vmem:[#allocation3 + $0x20] sm:$0xff] }
  0x99   : > { %905 = vmatpush1.bf16.msra.mxu0 %v904_v17  ;;  %963 = vmatprep.subr.bf16.mxu1 %v962_v32  ;;  %v406_v8 = vld [vmem:[%s1467_s9 + $0x2a8] sm:$0xff]  ;;  %v928_v11 = vpack.c.bf16 %v402_v7, %v399_v6  ;;  %v320_v12 = vld [vmem:[#allocation3 + $0x38] sm:$0xff]  ;;  %v405_v14 = vld [vmem:[%s1467_s9 + $0x2a0] sm:$0xff] }
  0x9a   : > { %907 = vmatprep.subr.bf16.mxu0 %v906_v22  ;;  %v930_v13 = vpack.c.bf16 %v409_v9, %v406_v8  ;;  %v408_v15 = vld [vmem:[%s1467_s9 + $0x2b8] sm:$0xff]  ;;  %v415_v17 = vld [vmem:[%s1467_s9 + $0x2f0] sm:$0xff]  ;;  %v414_v22 = vld [vmem:[%s1467_s9 + $0x2e8] sm:$0xff] }
  0x9b   : > { %v412_v16 = vld [vmem:[%s1467_s9 + $0x2d8] sm:$0xff]  ;;  %v319_v18 = vld [vmem:[#allocation3 + $0x30] sm:$0xff]  ;;  %v932_v19 = vpack.c.bf16 %v408_v15, %v405_v14  ;;  %v630_v27 = vld [vmem:[%s250_s30] sm:$0x7] }
  0x9c   : > { %965 = vmatpush3.bf16.msra.mxu1 %v964_v41  ;;  %v934_v20 = vpack.c.bf16 %v415_v17, %v412_v16  ;;  %v411_v21 = vld [vmem:[%s1467_s9 + $0x2d0] sm:$0xff]  ;;  %v643_v29 = vrot.slane %v630_v27, %v642_v26  ;;  %v639_v48 = vrot.slane %v630_v27, %v638_v45 }
  0x9d   : > { %909 = vmatpush1.bf16.msra.mxu0 %v908_v30  ;;  %967 = vmatprep.subr.bf16.mxu1 %v966_v43  ;;  %v936_v23 = vpack.c.bf16 %v414_v22, %v411_v21  ;;  %v634_v43 = vsub.s32 0, %v633_v25 }
  0x9e   : > { %911 = vmatprep.subr.bf16.mxu0 %v910_v35 }
  0x9f   : > { %v635_v47 = vrot.slane %v630_v27, %v634_v43 }
  0xa0   : > { %969 = vmatpush3.bf16.msra.mxu1 %v968_v51 }
  0xa1   : > { %913 = vmatpush1.bf16.msra.mxu0 %v912_v42 }
  0xa2   : > { %915 = vmatprep.subr.bf16.mxu0 %v914_v46 }
  0xa3   : > { %571 = vmatmul.mubr.f32.vlgmr.msra.gmra.mrb[0].mxu1 %v313_v58 }
  0xa4   : > { %575 = vmatprep.mubr.f32.mxu1 %v316_v60 }
  0xa5   : > { %917 = vmatpush1.bf16.msra.mxu0 %v916_v52 }
  0xa6   : > { %919 = vmatprep.subr.bf16.mxu0 %v918_v53 }
  0xa7   : > { %576 = vmatmul.mubr.f32.gmra.mrb[2].mxu1 %v315_v2 }
  0xa8   : > { %580 = vmatprep.mubr.f32.mxu1 %v318_v4 }
  0xa9   : > { %921 = vmatpush1.bf16.msra.mxu0 %v920_v59 }
  0xaa   : > { %923 = vmatprep.subr.bf16.mxu0 %v922_v61 }
  0xab   : > { %581 = vmatmul.mubr.f32.gmra.mrb[4].mxu1 %v317_v10 }
  0xac   : > { %585 = vmatprep.mubr.f32.mxu1 %v320_v12 }
  0xad   : > { %925 = vmatpush1.bf16.msra.mxu0 %v924_v3 }
  0xae   : > { %927 = vmatprep.subr.bf16.mxu0 %v926_v5 }
  0xaf   : > { %586 = vmatmul.mubr.f32.gmra.mrb[6].mxu1 %v319_v18 }
  0xb1   : > { %929 = vmatpush1.bf16.msra.mxu0 %v928_v11 }
  0xb2   : > { %931 = vmatprep.subr.bf16.mxu0 %v930_v13 }
  0xb5   : > { %933 = vmatpush1.bf16.msra.mxu0 %v932_v19 }
  0xb6   : > { %935 = vmatprep.subr.bf16.mxu0 %v934_v20 }
  0xb9   : > { %937 = vmatpush1.bf16.msra.mxu0 %v936_v23 }
  0xbc   : > { %482 = vmatmul.mubr.f32.vlgmr.msra.gmra.mrb[0].mxu0 %v313_v58 }
  0xbd   : > { %487 = vmatprep.mubr.f32.mxu0 %v316_v60 }
  0xc0   : > { %488 = vmatmul.mubr.f32.gmra.mrb[2].mxu0 %v315_v2 }
  0xc1   : > { %493 = vmatprep.mubr.f32.mxu0 %v318_v4 }
  0xc4   : > { %494 = vmatmul.mubr.f32.gmra.mrb[4].mxu0 %v317_v10 }
  0xc5   : > { %499 = vmatprep.mubr.f32.mxu0 %v320_v12 }
  0xc8   : > { %500 = vmatmul.mubr.f32.gmra.mrb[6].mxu0 %v319_v18 }
 0x176   : > { %v862_v28 = vpop.f32.mrb[0].mxu1 }
 0x177   : > { %v863_v30 = vpop.f32.mrb[1].mxu1 }
 0x178   : > { %v864_v31 = vadd.f32 %v863_v30, %v862_v28 }
 0x17a   : > { %v649_v32 = vadd.f32 %v864_v31, %v643_v29  ;;  %v865_v33 = vpop.f32.mrb[2].mxu1 }
 0x17b   : > { %v866_v34 = vpop.f32.mrb[3].mxu1 }
 0x17c   : > { %661 = vst [vmem:[%s1571_s8 + $0x10] sm:$0xff] %v649_v32  ;;  %v867_v35 = vadd.f32 %v866_v34, %v865_v33 }
 0x17e   : > { %v652_v36 = vadd.f32 %v867_v35, %v643_v29  ;;  %v868_v37 = vpop.f32.mrb[4].mxu1 }
 0x17f   : > { %v869_v38 = vpop.f32.mrb[5].mxu1 }
 0x180   : > { %664 = vst [vmem:[%s1571_s8 + $0x28] sm:$0xff] %v652_v36  ;;  %v870_v39 = vadd.f32 %v869_v38, %v868_v37 }
 0x182   : > { %v655_v40 = vadd.f32 %v870_v39, %v643_v29  ;;  %v871_v41 = vpop.f32.mrb[6].mxu1 }
 0x183   : > { %v872_v42 = vpop.f32.mrb[7].mxu1 }
 0x184   : > { %667 = vst [vmem:[%s1571_s8 + $0x40] sm:$0xff] %v655_v40  ;;  %v873_v44 = vadd.f32 %v872_v42, %v871_v41 }
 0x186   : > { %v658_v46 = vadd.f32 %v873_v44, %v643_v29 }
 0x188   : > { %670 = vst [vmem:[%s1571_s8 + $0x58] sm:$0xff] %v658_v46 }
 0x18f   : > { %v483_v49 = vpop.f32.mrb[0].mxu0 }
 0x190   : > { %v647_v50 = vadd.f32 %v635_v47, %v483_v49  ;;  %v485_v51 = vpop.f32.mrb[1].mxu0 }
 0x191   : > { %v648_v52 = vadd.f32 %v639_v48, %v485_v51 }
 0x192   : > { %659 = vst [vmem:[%s1571_s8] sm:$0xff] %v647_v50 }
 0x193   : > { %660 = vst [vmem:[%s1571_s8 + $0x8] sm:$0xff] %v648_v52  ;;  %v489_v53 = vpop.f32.mrb[2].mxu0 }
 0x194   : > { %v650_v54 = vadd.f32 %v635_v47, %v489_v53  ;;  %v491_v55 = vpop.f32.mrb[3].mxu0 }
 0x195   : > { %v651_v56 = vadd.f32 %v639_v48, %v491_v55 }
 0x196   : > { %662 = vst [vmem:[%s1571_s8 + $0x18] sm:$0xff] %v650_v54 }
 0x197   : > { %663 = vst [vmem:[%s1571_s8 + $0x20] sm:$0xff] %v651_v56  ;;  %v495_v57 = vpop.f32.mrb[4].mxu0 }
 0x198   : > { %v653_v58 = vadd.f32 %v635_v47, %v495_v57  ;;  %v497_v59 = vpop.f32.mrb[5].mxu0 }
 0x199   : > { %v654_v60 = vadd.f32 %v639_v48, %v497_v59 }
 0x19a   : > { %665 = vst [vmem:[%s1571_s8 + $0x30] sm:$0xff] %v653_v58 }
 0x19b   : > { %666 = vst [vmem:[%s1571_s8 + $0x38] sm:$0xff] %v654_v60  ;;  %v501_v61 = vpop.f32.mrb[6].mxu0 }
 0x19c   : > { %v656_v62 = vadd.f32 %v635_v47, %v501_v61  ;;  %v503_v63 = vpop.f32.mrb[7].mxu0 }
 0x19d   : > { %v657_v0 = vadd.f32 %v639_v48, %v503_v63 }
 0x19e   : > { %668 = vst [vmem:[%s1571_s8 + $0x48] sm:$0xff] %v656_v62 }
 0x19f   : > { %669 = vst [vmem:[%s1571_s8 + $0x50] sm:$0xff] %v657_v0 }
 0x1a0   : > { %1162 = shalt.err (!%p1159_p8)
}
 0x1a1   : > { %s1163_s18 = scalar_lea.hbm %s1588_s23, 1536  ;;  %s1167_s6 = scalar_lea.hbm %s1644_s3, 3072 }
 0x1a2   : > { %p1164_p10 = scmp.ne.s32.totalorder %s1588_s23, %s1163_s18  ;;  %p1168_p3 = scmp.lt.u32.totalorder %s1588_s23, %s1644_s3 }
 0x1a3   : > { %p1169_p2 = scmp.lt.u32.totalorder %s1167_s6, %s1163_s18  ;;  %p1171_p4 = scmp.lt.u32.totalorder %s1163_s18, %s1588_s23 }
 0x1a4   : > { %p1165_p13 = pnand %p1164_p10, %p1669_p6 }
 0x1a5   : > { %p1170_p11 = por %p1169_p2, %p1168_p3 }
 0x1a6   : > { %p1166_p7 = pneg %p1165_p13 }
 0x1a7   : > { %p1172_p1 = por %p1171_p4, %p1170_p11 }
 0x1a9   : > { %p1173_p12 = pnand %p1172_p1, %p1166_p7 }
 0x1ab   : > { %1176 = shalt.err (!%p1173_p12)
}
 0x1ac   : > { %s1246_s30 = smov 384   ;;  %s1247_s7 = smov 768  }
 0x1ad   : > { %s1248_s8 = smov 24  }
 0x1ae   : > { %983 = dma.vmem_to_hbm [thread:$0]  (%p1669_p6), %s1590_s27, 1536, %s1588_s23, %s672_s15, %s1246_s30, %s1247_s7, %s1248_s8  }
 0x1af PF: > { %s703_s25 = sand.u32 1, %s1215_s12   ;;  %p1670_p0 = scmp.ne.s32.totalorder %s1659_s4, 0 }
 0x1b0   : > { %p1671_p9 = scmp.ge.s32.totalorder %s1235_s17, 2  ;;  %s704_s22 = scalar_lea.sflag [#allocation5], %s703_s25 }
 0x1b2   : > { %p997_p5 = pnand %p1671_p9, %p1670_p0 }
 0x1b4   : > { %1210 = dma.done.wait (!%p997_p5), %s704_s22, 1536  }
 0x1b5   : > { %1212 = vsyncadd (!%p997_p5), %s704_s22, 4294965760  ;;  %s20_s17 = sadd.s32 1, %s1235_s17   ;;  %s1672_s28 = sld [smem:[#allocation13_spill]] }
 0x1b6   : > { %p17_p8 = scmp.ge.s32.totalorder %s20_s17, 4   ;;  %s1673_s12 = smov %s1219_s13 }
 0x1b7   : > { %s1674_s13 = smov %s1223_s14  ;;  %s1675_s14 = smov %s1317_s24 }
 0x1b8   : > { %s1676_s15 = smov %s1231_s16  ;;  %19 = sbr.rel (!%p17_p8) target bundleno = 9 (0x9), region = 102 }
 0x1bb   : > { %s1677_s16 = smov %s1672_s28 }
 0x1bf   :  { %709 = vsyncpa [#allocation4], 1 }
 0x1c0   :  { %711 = vsyncpa [#allocation4 + $0x1], 1 }
 0x1c1   :  { %712 = vsyncpa [#allocation7], 1 }
 0x1c2   :  { %714 = vsyncpa [#allocation7 + $0x1], 1 }
 0x1c3   :  { %715 = vsyncpa [#allocation5], 1 }
 0x1c4   :  { %717 = vsyncpa [#allocation5 + $0x1], 1 }

</bundles_post_ra>
